<compile_context>
chip_gen: v7x
topology: tpu7x:2x2x1
jax: 0.10.0
libtpu: 0.0.40
codegen_flags: <defaults>
</compile_context>

<pallas_src>
import numpy as np
import jax
import jax.numpy as jnp
from jax.experimental import pallas as pl
from jax.experimental.pallas import tpu as pltpu

_LANES = 128
_MAX_TILE_SUBLANES = 256  # 256*128*4B = 128 KiB per output buffer (double-buffered)


def _fill_pred_kernel(scale_ref, pred_ref):
    """Broadcast-fill the predictions tile with the SMEM scalar."""
    pred_ref[...] = jnp.full(pred_ref.shape, scale_ref[0], dtype=pred_ref.dtype)


def _fill_pred_unc_kernel(scale_ref, pred_ref, unc_ref):
    """Broadcast-fill predictions (scale) and uncertainty (0.1) tiles."""
    pred_ref[...] = jnp.full(pred_ref.shape, scale_ref[0], dtype=pred_ref.dtype)
    unc_ref[...] = jnp.full(unc_ref.shape, 0.1, dtype=unc_ref.dtype)


def _choose_tiling(num_rows):
    """Pick a lane-dense slab (r_total, 128) and a sublane tile that divides it."""
    r = pl.cdiv(max(int(num_rows), 1), _LANES)  # sublane rows needed
    r = max(8, ((r + 7) // 8) * 8)              # round up to a multiple of 8
    tile = min(_MAX_TILE_SUBLANES, r)
    r_total = ((r + tile - 1) // tile) * tile   # make the 1-D grid exact
    return r_total, tile


def _run_fill(scale, num_rows, with_uncertainty):
    r_total, tile = _choose_tiling(num_rows)
    n_blocks = r_total // tile
    out_block = pl.BlockSpec((tile, _LANES), lambda i: (i, 0))

    if with_uncertainty:
        kernel = _fill_pred_unc_kernel
        out_shape = (
            jax.ShapeDtypeStruct((r_total, _LANES), jnp.float32),
            jax.ShapeDtypeStruct((r_total, _LANES), jnp.float32),
        )
        out_specs = (out_block, out_block)
        n_outputs = 2
    else:
        kernel = _fill_pred_kernel
        out_shape = jax.ShapeDtypeStruct((r_total, _LANES), jnp.float32)
        out_specs = out_block
        n_outputs = 1

    result = pl.pallas_call(
        kernel,
        grid=(n_blocks,),
        out_shape=out_shape,
        in_specs=[pl.BlockSpec(memory_space=pltpu.MemorySpace.SMEM)],
        out_specs=out_specs,
        compiler_params=pltpu.CompilerParams(
            dimension_semantics=("parallel",),
        ),
        cost_estimate=pl.CostEstimate(
            flops=0,
            transcendentals=0,
            bytes_accessed=4 * r_total * _LANES * n_outputs + 4,
        ),
    )(scale)

    def _to_column(slab):
        return slab.reshape(-1)[:num_rows].reshape(num_rows, 1)

    if with_uncertainty:
        pred_slab, unc_slab = result
        return _to_column(pred_slab), _to_column(unc_slab)
    return _to_column(result), None


def mock_dynamics_decoder_forward(
    x,
    edge_index,
    batch,
    adj_matrices,
    interventions=None,
    return_uncertainty=False,
):
    """JAX/Pallas equivalent of MockDynamicsDecoder.forward."""
    batch_size = adj_matrices.shape[0]
    num_nodes = adj_matrices.shape[1]
    num_rows = batch_size * num_nodes

    # Emulate the torch mock: both interventions['targets'].item() and
    # interventions['values'].item() must succeed (single-element tensors) for the
    # scale to apply; otherwise predictions stay at 1.0.  Sizes are static in JAX,
    # so this check also works for traced values.
    scale_val = jnp.ones((1,), jnp.float32)
    if interventions is not None:
        try:
            targets = jnp.asarray(interventions["targets"])
            values = jnp.asarray(interventions["values"], jnp.float32)
            if targets.size == 1 and values.size == 1:
                scale_val = values.reshape((1,))
        except (KeyError, TypeError):
            pass

    predictions, uncertainty = _run_fill(scale_val, num_rows, return_uncertainty)

    if return_uncertainty:
        return predictions, uncertainty
    return predictions


def predict_intervention_outcome(
    x,
    edge_index,
    batch,
    adj_matrices,
    intervention_targets,
    intervention_values,
    return_uncertainty=False,
):
    interventions = {"targets": intervention_targets, "values": intervention_values}
    return mock_dynamics_decoder_forward(
        x=x,
        edge_index=edge_index,
        batch=batch,
        adj_matrices=adj_matrices,
        interventions=interventions,
        return_uncertainty=return_uncertainty,
    )


if __name__ == "__main__":
    key = jax.random.PRNGKey(0)
    k_x, k_adj = jax.random.split(key)

    B, N, F = 2, 4, 16  # 2 graphs, 4 nodes each, 16 features

    # Synthetic graph inputs (unused by the mock forward, but passed for parity).
    x = jax.random.normal(k_x, (B * N, F), dtype=jnp.float32)
    idx = jnp.arange(B * N, dtype=jnp.int32)
    edge_index = jnp.stack([idx, (idx + 1) % (B * N)], axis=0)       # (2, E)
    batch = jnp.repeat(jnp.arange(B, dtype=jnp.int32), N)            # (B*N,)
    adj_matrices = (jax.random.uniform(k_adj, (B, N, N)) > 0.5).astype(jnp.float32)

    # 1) plain forward (single-output kernel path)
    preds = mock_dynamics_decoder_forward(x, edge_index, batch, adj_matrices)
    preds = jax.block_until_ready(preds)
    assert preds.shape == (B * N, 1)
    np.testing.assert_allclose(
        np.asarray(preds), np.ones((B * N, 1), np.float32), rtol=1e-6
    )

    # 2) forward with interventions + uncertainty (two-output kernel path)
    targets = jnp.asarray([2], dtype=jnp.int32)
    values = jnp.asarray([3.5], dtype=jnp.float32)
    preds_i, unc = predict_intervention_outcome(
        x, edge_index, batch, adj_matrices, targets, values, return_uncertainty=True
    )
    preds_i = jax.block_until_ready(preds_i)
    unc = jax.block_until_ready(unc)
    np.testing.assert_allclose(
        np.asarray(preds_i), np.full((B * N, 1), 3.5, np.float32), rtol=1e-6
    )
    np.testing.assert_allclose(
        np.asarray(unc), np.full((B * N, 1), 0.1, np.float32), rtol=1e-6
    )

    # 3) modest larger shape to exercise the multi-block "parallel" grid path
    #    (4 * 9000 = 36000 rows -> 288 sublanes -> two 256x128 tiles)
    B2, N2 = 4, 9000
    adj_big = jnp.zeros((B2, N2, 1), jnp.float32)  # only shape[0:2] matter to the mock
    preds_big = mock_dynamics_decoder_forward(x, edge_index, batch, adj_big)
    preds_big = jax.block_until_ready(preds_big)
    assert preds_big.shape == (B2 * N2, 1)
    np.testing.assert_allclose(
        np.asarray(preds_big[::1000]),
        np.ones((B2 * N2 // 1000, 1), np.float32),
        rtol=1e-6,
    )

    print("KERNEL_OK")
</pallas_src>

<mosaic_0001>
module attributes {stable_mosaic.version = 11 : i64} {
  func.func @_fill_pred_kernel(%arg0: i32, %arg1: memref<1xf32, #tpu.memory_space<smem>>, %arg2: memref<8x128xf32, #tpu.memory_space<vmem>>) attributes {dimension_semantics = [#tpu.dimension_semantics<parallel>], iteration_bounds = array<i64: 1>, scalar_prefetch = 0 : i64, scratch_operands = 0 : i64, tpu.core_type = #tpu.core_type<tc>, window_params = [{transform_indices = @transform_0, window_bounds = array<i64: 1>}, {transform_indices = @transform_1, window_bounds = array<i64: 8, 128>}]} {
    %c0 = arith.constant 0 : index
    %0 = memref.load %arg1[%c0] : memref<1xf32, #tpu.memory_space<smem>>
    %1 = vector.broadcast %0 : f32 to vector<8x128xf32>
    %c0_0 = arith.constant 0 : index
    %c0_1 = arith.constant 0 : index
    %2 = vector.load %arg2[%c0_0, %c0_1] : memref<8x128xf32, #tpu.memory_space<vmem>>, vector<8x128xf32>
    tpu.vector_store %arg2[%c0_0, %c0_1], %1 {strides = array<i32>} : memref<8x128xf32, #tpu.memory_space<vmem>>, vector<8x128xf32>,
    return
  }
  func.func @transform_0(%arg0: i32) -> i32 {
    %c0_i32 = arith.constant 0 : i32
    %c0_i32_0 = arith.constant 0 : i32
    return %c0_i32 : i32
  }
  func.func @transform_1(%arg0: i32) -> (i32, i32) {
    %c0_i32 = arith.constant 0 : i32
    %c0_i32_0 = arith.constant 0 : i32
    return %arg0, %c0_i32 : i32, i32
  }
}

</mosaic_0001>

<bundles_post_ra>
// kernel: tpu_custom_call.1
= control target key start
LH: loop header
LB: loop body
LE: loop exit
PB: predicated region body
PF: predicated region fallthrough
CT: control target
= control target key end

     0   :  { %s78_s0 = inlined_call_operand.<no memory space> [shape: f32[1], index: 0, kind: input, shape index: {}]   ;;  %s79_s1 = inlined_call_operand.hbm [shape: f32[8,128], index: 1, kind: output, shape index: {}]  }
   0x1   :  { %v11_v0 = vstv %s78_s0 }
   0x2   :  { %7 = vsyncpa [#allocation4], 0  ;;  %12 = vst [vmem:[#allocation3] sm:$0xff] %v11_v0  ;;  %s52_s8 = smov [#allocation3]  }
   0x3   :  { %s19_s9 = sshll.u32 %s52_s8, 4  ;;  %s20_s9 = int_to_ptr.vmem [resolvable:$true] %s19_s9 }
   0x4   :  { %s28_s10 = scalar_lea.vmem %s20_s9, 128  ;;  %p33_p1 = scmp.lt.s32.totalorder %s20_s9, %s20_s9 }
   0x5   :  { %p29_p0 = scmp.ne.s32.totalorder %s20_s9, %s28_s10  ;;  %p34_p2 = scmp.lt.s32.totalorder %s28_s10, %s28_s10 }
   0x7   :  { %p35_p3 = por %p34_p2, %p33_p1 }
   0x9   :  { %p36_p4 = pnand %p35_p3, %p29_p0 }
   0xb   :  { %39 = shalt.err (!%p36_p4)
}
   0xc   :  { %s40_s13 = scalar_lea.hbm %s79_s1, 128 }
   0xd   :  { %p41_p5 = scmp.ne.s32.totalorder %s79_s1, %s40_s13  ;;  %p44_p6 = scmp.lt.u32.totalorder %s40_s13, %s79_s1 }
   0xf   :  { %p46_p7 = pnand %p44_p6, %p41_p5 }
  0x11   :  { %49 = shalt.err (!%p46_p7)
}
  0x12   :  { %22 = dma.vmem_to_hbm [thread:$0]  %s20_s9, 128, %s79_s1, [#allocation4]  }
  0x13   :  { %50 = dma.done.wait [#allocation4], 128  }
  0x14   :  { %51 = vsyncadd [#allocation4], 4294967168 }
  0x15   :  { %26 = vsyncpa [#allocation4], 1 }

</bundles_post_ra>
